<compile_context>
chip_gen: v7x
topology: tpu7x:2x2x1
jax: 0.10.0
libtpu: 0.0.40
codegen_flags: <defaults>
</compile_context>

<pallas_src>
import functools
import math

import jax
import jax.numpy as jnp
from jax.experimental import pallas as pl
from jax.experimental.pallas import tpu as pltpu

BN_EPS = 1e-5
_LANE = 128


def _round_up(x, m):
    return ((x + m - 1) // m) * m


def _residual_kernel(x_ref, w_ref, gb_ref, xe_ref, out_ref, *,
                     n_batch, num_z_tiles):
    """One grid step = one lane-dense (N, tile_o) column tile of the output.

    Steps [0, num_z_tiles)         : z = ReLU(BN(x @ W_tile))
    Steps [num_z_tiles, num_steps) : copy the x-echo columns (the concat tail)
    """
    j = pl.program_id(0)

    @pl.when(j < num_z_tiles)
    def _compute_tile():
        # Matmul in the storage dtype (bf16 by default), f32 accumulation.
        y = jnp.dot(x_ref[...], w_ref[...],
                    preferred_element_type=jnp.float32)

        # Training-mode BatchNorm1d statistics (biased variance), single-pass
        # sum / sum-of-squares form.  The clamp guards tiny negative values
        # from cancellation; switch to a two-pass form if activations become
        # badly conditioned (|mean| >> std).
        inv_n = jnp.float32(1.0 / n_batch)
        s1 = jnp.sum(y, axis=0, keepdims=True)
        s2 = jnp.sum(y * y, axis=0, keepdims=True)
        mean = s1 * inv_n
        var = jnp.maximum(s2 * inv_n - mean * mean, 0.0)

        # Folded affine: only (1, tile_o) rows pay the extra math, the full
        # (N, tile_o) slab sees just mul + add + max.
        gamma = gb_ref[0:1, :]
        beta = gb_ref[1:2, :]
        a = gamma * jax.lax.rsqrt(var + BN_EPS)
        c = beta - mean * a
        out_ref[...] = jnp.maximum(y * a + c, 0.0)

    @pl.when(j >= num_z_tiles)
    def _echo_tile():
        out_ref[...] = xe_ref[...]


def residual_prepare_params(w, gamma, beta, *, matmul_dtype=jnp.bfloat16):
    """One-time (init) parameter prep.

    w:            (o, i) float32 -- PyTorch Linear weight layout.
    gamma, beta:  (o,)   float32 -- BatchNorm1d affine.

    The Linear bias is intentionally dropped: under training-mode BN with
    batch statistics it cancels exactly in (y - mean).
    """
    o, i = w.shape
    o_pad = _round_up(o, _LANE)
    w_t = jnp.transpose(w)                        # (i, o): transpose once here
    if o_pad != o:
        pad = o_pad - o
        w_t = jnp.pad(w_t, ((0, 0), (0, pad)))
        gamma = jnp.pad(gamma, (0, pad), constant_values=1.0)
        beta = jnp.pad(beta, (0, pad))
    w_t = w_t.astype(matmul_dtype)
    gb = jnp.stack([gamma, beta], axis=0).astype(jnp.float32)   # (2, o_pad)
    return {"w_t": w_t, "gb": gb, "out_features": o}


def residual_forward(x, params, *, feature_tile=512):
    """concat([ReLU(BN(x @ W.T)), x], axis=1), training-mode BatchNorm1d."""
    w_t, gb, o = params["w_t"], params["gb"], params["out_features"]
    n, i = x.shape
    i_w, o_pad = w_t.shape
    assert i == i_w, (i, i_w)
    i_pad = _round_up(i, _LANE)
    mm_dtype = w_t.dtype

    # Per-call input prep only (O(N*i), cheap); weights/params prepped at init.
    x_mm = x if x.dtype == mm_dtype else x.astype(mm_dtype)
    x_echo = x if i_pad == i else jnp.pad(x, ((0, 0), (0, i_pad - i)))

    # Lane-dense output tile: must divide both o_pad and i_pad; prefer the
    # largest tile that still leaves >= 2 z-tiles so v7x's two TensorCores
    # both get work and the W-tile DMA overlaps compute on every generation.
    g = math.gcd(o_pad, i_pad)
    feature_tile = max(feature_tile, _LANE)
    candidates = [c for c in (512, 384, 256, 128)
                  if c <= feature_tile and g % c == 0]
    tile_o = next((c for c in candidates if o_pad // c >= 2), candidates[-1])
    num_z = o_pad // tile_o
    num_e = i_pad // tile_o
    num_steps = num_z + num_e

    kernel = functools.partial(_residual_kernel, n_batch=n, num_z_tiles=num_z)

    mm_bytes = jnp.dtype(mm_dtype).itemsize
    # VMEM: resident x + double-buffered W / param / echo / out tiles + the
    # (N, tile_o) f32 intermediates the body materializes; cap 32 MiB (v7x).
    tile_bytes = (2 * n * i * mm_bytes          # resident x (matmul dtype)
                  + 2 * i * tile_o * mm_bytes   # W tiles (double-buffered)
                  + 2 * 2 * tile_o * 4          # packed gamma/beta tiles
                  + 2 * n * tile_o * 4          # x-echo tiles
                  + 2 * n * tile_o * 4          # output tiles
                  + 4 * n * tile_o * 4)         # in-body f32 intermediates
    vmem_limit = int(min(32 << 20, max(16 << 20, 2 * tile_bytes)))

    cost = pl.CostEstimate(
        flops=2 * n * i * o_pad + 10 * n * o_pad,
        transcendentals=o_pad,                  # one rsqrt per output feature
        bytes_accessed=(n * i * mm_bytes + i * o_pad * mm_bytes
                        + 2 * o_pad * 4 + n * i_pad * 4
                        + n * (o_pad + i_pad) * 4),
    )

    fused = pl.pallas_call(
        kernel,
        out_shape=jax.ShapeDtypeStruct((n, o_pad + i_pad), jnp.float32),
        grid_spec=pltpu.PrefetchScalarGridSpec(
            num_scalar_prefetch=0,
            grid=(num_steps,),
            in_specs=[
                # x (matmul dtype) -- constant block index => stays resident.
                pl.BlockSpec((n, i), lambda j: (0, 0)),
                # W column tile; index clamped so echo steps reuse the last
                # tile (no extra DMA).  If the W DMA is still exposed in a
                # trace, add pipeline_mode=pl.Buffered(3) here.
                pl.BlockSpec((i, tile_o),
                             lambda j: (0, jnp.minimum(j, num_z - 1))),
                # Packed [gamma; beta] tile -- one param DMA per step.
                pl.BlockSpec((2, tile_o),
                             lambda j: (0, jnp.minimum(j, num_z - 1))),
                # f32 x-echo column tile (only advances on echo steps).
                pl.BlockSpec((n, tile_o),
                             lambda j: (0, jnp.maximum(j - num_z, 0))),
            ],
            out_specs=pl.BlockSpec((n, tile_o), lambda j: (0, j)),
        ),
        compiler_params=pltpu.CompilerParams(
            dimension_semantics=("parallel",),   # v7x: split steps over 2 TCs
            vmem_limit_bytes=vmem_limit,
        ),
        cost_estimate=cost,
    )(x_mm, w_t, gb, x_echo)

    if o == o_pad and i == i_pad:
        return fused                             # zero-post-processing path
    # Single gather pass removes the lane padding between z and the x echo.
    return jnp.concatenate([fused[:, :o], fused[:, o_pad:o_pad + i]], axis=1)


def residual_reference(x, w, b, gamma, beta):
    """Pure-JAX reference matching PyTorch Residual.forward (training BN)."""
    y = x @ w.T + b
    mean = jnp.mean(y, axis=0, keepdims=True)
    var = jnp.mean((y - mean) ** 2, axis=0, keepdims=True)
    z = gamma * (y - mean) / jnp.sqrt(var + BN_EPS) + beta
    z = jnp.maximum(z, 0.0)
    return jnp.concatenate([z, x], axis=1)


if __name__ == "__main__":
    key = jax.random.PRNGKey(0)
    k_x, k_w, k_b, k_g, k_be = jax.random.split(key, 5)

    # Small CTGAN-like shapes; O is deliberately not a multiple of 128 so the
    # lane padding, the multi-tile feature grid and the echo path are all
    # exercised.
    N, I, O = 8, 32, 200

    x = jax.random.normal(k_x, (N, I), dtype=jnp.float32)

    # PyTorch-like init: Linear weight/bias ~ U(-1/sqrt(I), 1/sqrt(I)).
    bound = 1.0 / jnp.sqrt(jnp.float32(I))
    w = jax.random.uniform(k_w, (O, I), minval=-bound, maxval=bound,
                           dtype=jnp.float32)            # PyTorch layout (o, i)
    b = jax.random.uniform(k_b, (O,), minval=-bound, maxval=bound,
                           dtype=jnp.float32)
    gamma = 1.0 + 0.1 * jax.random.normal(k_g, (O,), dtype=jnp.float32)
    beta = 0.1 * jax.random.normal(k_be, (O,), dtype=jnp.float32)

    ref = residual_reference(x, w, b, gamma, beta)

    # Exact-precision path (f32 MXU) -- tight tolerance.  The Linear bias is
    # dropped inside the kernel; it cancels exactly under training-mode BN.
    params_f32 = residual_prepare_params(w, gamma, beta,
                                         matmul_dtype=jnp.float32)
    out_f32 = jax.block_until_ready(residual_forward(x, params_f32))
    assert out_f32.shape == (N, O + I), out_f32.shape
    assert jnp.allclose(out_f32, ref, atol=1e-4, rtol=1e-4), \
        float(jnp.max(jnp.abs(out_f32 - ref)))

    # Default bf16-MXU path (v5e/v6e/v7x all run the MXU natively in bf16);
    # BN re-normalizes the product so drift stays small -- loose tolerance.
    params_bf16 = residual_prepare_params(w, gamma, beta)
    out_bf16 = jax.block_until_ready(residual_forward(x, params_bf16))
    assert out_bf16.shape == (N, O + I), out_bf16.shape
    assert jnp.allclose(out_bf16, ref, atol=5e-2, rtol=5e-2), \
        float(jnp.max(jnp.abs(out_bf16 - ref)))

    print("KERNEL_OK")
</pallas_src>

<mosaic_0001>
module attributes {stable_mosaic.version = 11 : i64} {
  func.func @_residual_kernel(%arg0: i32, %arg1: memref<8x32xf32, #tpu.memory_space<vmem>>, %arg2: memref<32x128xf32, #tpu.memory_space<vmem>>, %arg3: memref<2x128xf32, #tpu.memory_space<vmem>>, %arg4: memref<8x128xf32, #tpu.memory_space<vmem>>, %arg5: memref<8x128xf32, #tpu.memory_space<vmem>>) attributes {dimension_semantics = [#tpu.dimension_semantics<parallel>], iteration_bounds = array<i64: 3>, scalar_prefetch = 0 : i64, scratch_operands = 0 : i64, tpu.core_type = #tpu.core_type<tc>, window_params = [{pipeline_mode = #tpu.pipeline_mode<synchronous>, transform_indices = @transform_0, window_bounds = array<i64: 8, 32>}, {transform_indices = @transform_1, window_bounds = array<i64: 32, 128>}, {transform_indices = @transform_2, window_bounds = array<i64: 2, 128>}, {transform_indices = @transform_3, window_bounds = array<i64: 8, 128>}, {transform_indices = @transform_4, window_bounds = array<i64: 8, 128>}]} {
    %c2_i32 = arith.constant 2 : i32
    %0 = arith.cmpi slt, %arg0, %c2_i32 : i32
    %1 = arith.extui %0 : i1 to i32
    %c0_i32 = arith.constant 0 : i32
    %2 = arith.cmpi ne, %1, %c0_i32 : i32
    scf.if %2 {
      %c0 = arith.constant 0 : index
      %c0_2 = arith.constant 0 : index
      %6 = vector.load %arg1[%c0, %c0_2] : memref<8x32xf32, #tpu.memory_space<vmem>>, vector<8x32xf32>
      %c0_3 = arith.constant 0 : index
      %c0_4 = arith.constant 0 : index
      %7 = vector.load %arg2[%c0_3, %c0_4] : memref<32x128xf32, #tpu.memory_space<vmem>>, vector<32x128xf32>
      %cst = arith.constant dense<0.000000e+00> : vector<8x128xf32>
      %8 = tpu.matmul %6, %7, %cst {dimension_numbers = #tpu.dot_dimension_numbers<[1], [0], [0], [1], [0, 0, 1, 1], [], []>} : vector<8x32xf32>, vector<32x128xf32>, vector<8x128xf32> -> vector<8x128xf32>
      %cst_5 = arith.constant dense<0.000000e+00> : vector<128xf32>
      %9 = vector.multi_reduction <add>, %8, %cst_5 [0] : vector<8x128xf32> to vector<128xf32>
      %10 = vector.shape_cast %9 : vector<128xf32> to vector<1x128xf32>
      %11 = arith.mulf %8, %8 : vector<8x128xf32>
      %cst_6 = arith.constant dense<0.000000e+00> : vector<128xf32>
      %12 = vector.multi_reduction <add>, %11, %cst_6 [0] : vector<8x128xf32> to vector<128xf32>
      %13 = vector.shape_cast %12 : vector<128xf32> to vector<1x128xf32>
      %cst_7 = arith.constant 1.250000e-01 : f32
      %14 = vector.broadcast %cst_7 : f32 to vector<1x128xf32>
      %15 = arith.mulf %10, %14 : vector<1x128xf32>
      %cst_8 = arith.constant 1.250000e-01 : f32
      %16 = vector.broadcast %cst_8 : f32 to vector<1x128xf32>
      %17 = arith.mulf %13, %16 : vector<1x128xf32>
      %18 = arith.mulf %15, %15 : vector<1x128xf32>
      %19 = arith.subf %17, %18 : vector<1x128xf32>
      %cst_9 = arith.constant 0.000000e+00 : f32
      %20 = vector.broadcast %cst_9 : f32 to vector<1x128xf32>
      %21 = arith.maximumf %19, %20 : vector<1x128xf32>
      %c0_10 = arith.constant 0 : index
      %c0_11 = arith.constant 0 : index
      %22 = vector.load %arg3[%c0_10, %c0_11] : memref<2x128xf32, #tpu.memory_space<vmem>>, vector<1x128xf32>
      %c1 = arith.constant 1 : index
      %c0_12 = arith.constant 0 : index
      %23 = vector.load %arg3[%c1, %c0_12] : memref<2x128xf32, #tpu.memory_space<vmem>>, vector<1x128xf32>
      %cst_13 = arith.constant 9.99999974E-6 : f32
      %24 = vector.broadcast %cst_13 : f32 to vector<1x128xf32>
      %25 = arith.addf %21, %24 : vector<1x128xf32>
      %26 = math.rsqrt %25 : vector<1x128xf32>
      %27 = arith.mulf %22, %26 : vector<1x128xf32>
      %28 = arith.mulf %15, %27 : vector<1x128xf32>
      %29 = arith.subf %23, %28 : vector<1x128xf32>
      %30 = vector.broadcast %27 : vector<1x128xf32> to vector<8x128xf32>
      %31 = arith.mulf %8, %30 : vector<8x128xf32>
      %32 = vector.broadcast %29 : vector<1x128xf32> to vector<8x128xf32>
      %33 = arith.addf %31, %32 : vector<8x128xf32>
      %cst_14 = arith.constant 0.000000e+00 : f32
      %34 = vector.broadcast %cst_14 : f32 to vector<8x128xf32>
      %35 = arith.maximumf %33, %34 : vector<8x128xf32>
      %c0_15 = arith.constant 0 : index
      %c0_16 = arith.constant 0 : index
      %36 = vector.load %arg5[%c0_15, %c0_16] : memref<8x128xf32, #tpu.memory_space<vmem>>, vector<8x128xf32>
      tpu.vector_store %arg5[%c0_15, %c0_16], %35 {strides = array<i32>} : memref<8x128xf32, #tpu.memory_space<vmem>>, vector<8x128xf32>,
    } else {
    }
    %c2_i32_0 = arith.constant 2 : i32
    %3 = arith.cmpi sge, %arg0, %c2_i32_0 : i32
    %4 = arith.extui %3 : i1 to i32
    %c0_i32_1 = arith.constant 0 : i32
    %5 = arith.cmpi ne, %4, %c0_i32_1 : i32
    scf.if %5 {
      %c0 = arith.constant 0 : index
      %c0_2 = arith.constant 0 : index
      %6 = vector.load %arg4[%c0, %c0_2] : memref<8x128xf32, #tpu.memory_space<vmem>>, vector<8x128xf32>
      %c0_3 = arith.constant 0 : index
      %c0_4 = arith.constant 0 : index
      %7 = vector.load %arg5[%c0_3, %c0_4] : memref<8x128xf32, #tpu.memory_space<vmem>>, vector<8x128xf32>
      tpu.vector_store %arg5[%c0_3, %c0_4], %6 {strides = array<i32>} : memref<8x128xf32, #tpu.memory_space<vmem>>, vector<8x128xf32>,
    } else {
    }
    return
  }
  func.func @transform_0(%arg0: i32) -> (i32, i32) {
    %c0_i32 = arith.constant 0 : i32
    %c0_i32_0 = arith.constant 0 : i32
    %c0_i32_1 = arith.constant 0 : i32
    return %c0_i32, %c0_i32_0 : i32, i32
  }
  func.func @transform_1(%arg0: i32) -> (i32, i32) {
    %c1_i32 = arith.constant 1 : i32
    %0 = arith.minsi %arg0, %c1_i32 : i32
    %c0_i32 = arith.constant 0 : i32
    %c0_i32_0 = arith.constant 0 : i32
    return %c0_i32, %0 : i32, i32
  }
  func.func @transform_2(%arg0: i32) -> (i32, i32) {
    %c1_i32 = arith.constant 1 : i32
    %0 = arith.minsi %arg0, %c1_i32 : i32
    %c0_i32 = arith.constant 0 : i32
    %c0_i32_0 = arith.constant 0 : i32
    return %c0_i32, %0 : i32, i32
  }
  func.func @transform_3(%arg0: i32) -> (i32, i32) {
    %c2_i32 = arith.constant 2 : i32
    %0 = arith.subi %arg0, %c2_i32 : i32
    %c0_i32 = arith.constant 0 : i32
    %1 = arith.maxsi %0, %c0_i32 : i32
    %c0_i32_0 = arith.constant 0 : i32
    %c0_i32_1 = arith.constant 0 : i32
    return %c0_i32_0, %1 : i32, i32
  }
  func.func @transform_4(%arg0: i32) -> (i32, i32) {
    %c0_i32 = arith.constant 0 : i32
    %c0_i32_0 = arith.constant 0 : i32
    return %c0_i32, %arg0 : i32, i32
  }
}

</mosaic_0001>

<bundles_post_ra>
// kernel: tpu_custom_call.1
= control target key start
LH: loop header
LB: loop body
LE: loop exit
PB: predicated region body
PF: predicated region fallthrough
CT: control target
= control target key end

     0   :  { %s1210_s0 = inlined_call_operand.hbm [shape: f32[8,32], index: 0, kind: input, shape index: {}]   ;;  %s1211_s1 = inlined_call_operand.hbm [shape: f32[32,256], index: 1, kind: input, shape index: {}]   ;;  %s1212_s2 = inlined_call_operand.hbm [shape: f32[2,256], index: 2, kind: input, shape index: {}]   ;;  %s1213_s3 = inlined_call_operand.vmem [shape: f32[8,128], index: 3, kind: input, shape index: {}]   ;;  %s1214_s4 = inlined_call_operand.hbm [shape: f32[8,384], index: 4, kind: output, shape index: {}]  }
   0x1   :  { %1223 = sst [smem:[#allocation15_spill]] %s1211_s1 }
   0x2   :  { %9 = vsyncpa [#allocation3], 0 }
   0x3   :  { %10 = vsyncpa [#allocation6], 0 }
   0x4   :  { %12 = vsyncpa [#allocation6 + $0x1], 0 }
   0x5   :  { %13 = vsyncpa [#allocation4], 0 }
   0x6   :  { %15 = vsyncpa [#allocation4 + $0x1], 0  ;;  %s934_s15 = smov 0   ;;  %s936_s16 = smov 0  }
   0x7   :  { %s938_s17 = smov 0   ;;  %s940_s18 = smov 0  }
   0x8   :  { %s942_s19 = smov 0   ;;  %s944_s20 = smov 0  }
   0x9   :  { %s946_s21 = smov 0  }
   0xa LB: > { %1224 = sst [smem:[#allocation12_spill]] %s893_s20  ;;  %s970_s22 = sadd.s32 1, %s897_s21   ;;  %s897_s21 = sphi %s946_s21, %s1251_s21   ;;  %s893_s20 = sphi %s944_s20, %s1245_s20   ;;  %s889_s19 = sphi %s942_s19, %s1250_s19   ;;  %s885_s18 = sphi %s940_s18, %s1249_s18   ;;  %s881_s17 = sphi %s938_s17, %s1248_s17   ;;  %s877_s16 = sphi %s936_s16, %s1247_s16   ;;  %s873_s15 = sphi %s934_s15, %s1246_s15  }
   0xb   : > { %p46_p0 = scmp.lt.s32.totalorder %s897_s21, 1  ;;  %p48_p1 = scmp.lt.s32.totalorder %s970_s22, 1 }
   0xc   : > { %s53_s23 = sadd.s32 1, %s893_s20  ;;  %p60_p2 = scmp.ne.s32.totalorder %s893_s20, %s889_s19 }
   0xd   : > { %s976_s24 = scalar_select %p46_p0, %s897_s21, 1 }
   0xe   : > { %s49_s25 = scalar_select %p48_p1, %s970_s22, 1 }
   0xf   : > { %p61_p3 = scmp.eq.s32.totalorder %s897_s21, 0  ;;  %p647_p6 = scmp.lt.s32.totalorder %s897_s21, 3 }
  0x10   : > { %s50_s26 = ssub.s32 %s976_s24, %s49_s25  ;;  %s189_s27 = sand.u32 1, %s897_s21  }
  0x11   : > { %p51_p4 = scmp.eq.s32.totalorder %s50_s26, 0  ;;  %p62_p5 = por %p61_p3, %p60_p2 }
  0x12   : > { %s191_s29 = sand.u32 1, %s893_s20   ;;  %s577_s5 = sshll.u32 %s976_s24, 7 }
  0x13   : > { %s986_s28 = scalar_select %p51_p4, %s893_s20, %s53_s23  }
  0x14   : > { %s576_s30 = sshll.u32 %s191_s29, 5  ;;  %s1226_s1 = sld [smem:[#allocation15_spill]] }
  0x15   : > { %1225 = sst [smem:[#allocation13_spill]] %s986_s28  ;;  %s193_s9 = scalar_lea.vmem [#allocation5], %s576_s30 }
  0x16   : > { %s201_s10 = sshll.u32 %s193_s9, 4  ;;  %p997_p7 = pnand %p647_p6, %p62_p5  ;;  %s1001_s10 = int_to_ptr.vmem [resolvable:$true] %s201_s10 }
  0x17   : > { %s1003_s12 = scalar_lea.sflag [#allocation6], %s189_s27 }
  0x18   : > { %s1227_s11 = scalar_select %p997_p7, 1, 0 }
  0x19   : > { %p1217_p9 = pneg %p997_p7 }
  0x1a   : > { %s995_s8 = scalar_lea.hbm %s1226_s1, %s577_s5  ;;  %s720_s25 = scalar_lea.hbm %s1226_s1, 1024 }
  0x1b   : > { %s715_s13 = scalar_lea.hbm %s995_s8, 512  ;;  %p721_p12 = scmp.lt.u32.totalorder %s995_s8, %s1226_s1 }
  0x1c   : > { %p716_p8 = scmp.ne.s32.totalorder %s995_s8, %s715_s13  ;;  %p722_p13 = scmp.lt.u32.totalorder %s720_s25, %s715_s13 }
  0x1d   : > { %p724_p1 = scmp.lt.u32.totalorder %s715_s13, %s995_s8 }
  0x1e   : > { %p718_p10 = pnand %p1217_p9, %p716_p8  ;;  %p723_p0 = por %p722_p13, %p721_p12 }
  0x20   : > { %p719_p11 = pneg %p718_p10  ;;  %p725_p2 = por %p724_p1, %p723_p0 }
  0x22   : > { %p726_p3 = pnand %p725_p2, %p719_p11 }
  0x24   : > { %729 = shalt.err (!%p726_p3)
}
  0x25   : > { %s730_s27 = scalar_lea.vmem %s1001_s10, 512  ;;  %s899_s5 = smov [#allocation5]  }
  0x26   : > { %p731_p4 = scmp.ne.s32.totalorder %s1001_s10, %s730_s27  ;;  %s735_s6 = sshll.u32 %s899_s5, 4  ;;  %s736_s6 = int_to_ptr.vmem [resolvable:$false] %s735_s6 }
  0x27   : > { %s737_s7 = scalar_lea.vmem %s736_s6, 1024  ;;  %p738_p8 = scmp.lt.s32.totalorder %s1001_s10, %s736_s6 }
  0x28   : > { %p733_p5 = pnand %p731_p4, %p1217_p9  ;;  %p739_p10 = scmp.lt.s32.totalorder %s737_s7, %s730_s27 }
  0x2a   : > { %p734_p6 = pneg %p733_p5  ;;  %p740_p12 = por %p739_p10, %p738_p8 }
  0x2c   : > { %p741_p13 = pnand %p740_p12, %p734_p6 }
  0x2e   : > { %744 = shalt.err (!%p741_p13)
}
  0x2f   : > { %s900_s9 = smov 256   ;;  %s901_s13 = smov 128  }
  0x30   : > { %s902_s14 = smov 8   ;;  %s1032_s23 = sadd.s32 4294967295, %s897_s21  }
  0x31   : > { %638 = dma.hbm_to_vmem [thread:$0]  (!%p997_p7), %s995_s8, 512, %s1001_s10, %s1003_s12, %s900_s9, %s901_s13, %s902_s14  }
  0x32   : > { %s570_s25 = sadd.s32 4294967294, %s897_s21   ;;  %p66_p11 = scmp.ne.s32.totalorder %s889_s19, %s885_s18 }
  0x33   : > { %p1216_p0 = scmp.eq.s32.totalorder %s1032_s23, 0  ;;  %s138_s26 = ssub.s32 %s897_s21, %s970_s22 }
  0x34   : > { %p139_p1 = scmp.eq.s32.totalorder %s138_s26, 0  ;;  %s141_s30 = sadd.s32 1, %s881_s17 }
  0x35   : > { %p1043_p2 = por %p1216_p0, %p66_p11  ;;  %p151_p3 = scmp.ne.s32.totalorder %s881_s17, %s877_s16 }
  0x36   : > { %s1050_s8 = scalar_select %p139_p1, %s881_s17, %s141_s30  }
  0x37   : > { %s1228_s27 = scalar_select %p1043_p2, 1, 0 }
  0x38   : > { %1229 = sst [smem:[#allocation14_spill]] %s1050_s8  ;;  %p152_p4 = scmp.eq.s32.totalorder %s1032_s23, 2 }
  0x39   : > { %p157_p5 = scmp.ne.s32.totalorder %s877_s16, %s873_s15  ;;  %p158_p6 = scmp.eq.s32.totalorder %s570_s25, 2 }
  0x3a   : > { %p573_p8 = scmp.ge.s32.totalorder %s897_s21, 1  ;;  %p1056_p10 = por %p152_p4, %p151_p3 }
  0x3b   : > { %p165_p12 = scmp.lt.s32.totalorder %s897_s21, 4  ;;  %p1061_p13 = por %p158_p6, %p157_p5 }
  0x3c   : > { %s1230_s18 = scalar_select %p1056_p10, 1, 0 }
  0x3d   : > { %s1231_s10 = scalar_select %p1061_p13, 1, 0 }
  0x3e   : > { %p1065_p11 = pnand %p573_p8, %p165_p12  ;;  %s903_s6 = smov [#allocation2]  }
  0x3f   : > { %s178_s7 = sshll.u32 %s903_s6, 4  ;;  %s578_s9 = sshll.u32 %s191_s29, 1  ;;  %s179_s7 = int_to_ptr.vmem [resolvable:$true] %s178_s7 }
  0x40   : > { %s1232_s5 = scalar_select %p1065_p11, 1, 0 }
  0x41   : > { %p631_p1 = pneg %p1065_p11  ;;  %s579_s13 = sshll.u32 %s976_s24, 5 }
  0x42   : > { %s1083_s30 = scalar_lea.hbm %s1212_s2, %s579_s13  ;;  %s215_s1 = scalar_lea.vmem [#allocation7], %s578_s9 }
  0x43   : > { %p1076_p3 = pnand %p631_p1, %p1216_p0  ;;  %s224_s28 = sshll.u32 %s215_s1, 4  ;;  %s1085_s28 = int_to_ptr.vmem [resolvable:$true] %s224_s28 }
  0x44   : > { %s745_s24 = scalar_lea.hbm %s1210_s0, 128 }
  0x45   : > { %p746_p4 = scmp.ne.s32.totalorder %s1210_s0, %s745_s24  ;;  %p747_p5 = pneg %p1076_p3 }
  0x46   : > { %p752_p12 = scmp.lt.u32.totalorder %s745_s24, %s1210_s0 }
  0x47   : > { %p748_p6 = pnand %p747_p5, %p746_p4 }
  0x49   : > { %p749_p8 = pneg %p748_p6 }
  0x4b   : > { %p754_p1 = pnand %p752_p12, %p749_p8 }
  0x4d   : > { %757 = shalt.err (!%p754_p1)
}
  0x4e   : > { %s758_s1 = scalar_lea.vmem %s179_s7, 128  ;;  %p766_p10 = scmp.lt.s32.totalorder %s179_s7, %s179_s7 }
  0x4f   : > { %p759_p0 = scmp.ne.s32.totalorder %s179_s7, %s758_s1  ;;  %p767_p2 = scmp.lt.s32.totalorder %s758_s1, %s758_s1 }
  0x51   : > { %p761_p9 = pnand %p759_p0, %p747_p5  ;;  %p768_p11 = por %p767_p2, %p766_p10 }
  0x53   : > { %p762_p13 = pneg %p761_p9 }
  0x55   : > { %p769_p7 = pnand %p768_p11, %p762_p13 }
  0x57   : > { %772 = shalt.err (!%p769_p7)
}
  0x58   : > { %634 = dma.hbm_to_vmem [thread:$0]  (!%p1076_p3), %s1210_s0, 128, %s179_s7, [#allocation3]  }
  0x59   : > { %s773_s9 = scalar_lea.hbm %s1083_s30, 32  ;;  %p1234_p0 = scmp.ne.s32.totalorder %s1227_s11, 0 }
  0x5a   : > { %p774_p4 = scmp.ne.s32.totalorder %s1083_s30, %s773_s9  ;;  %s778_s6 = scalar_lea.hbm %s1212_s2, 64 }
  0x5b   : > { %p1235_p9 = pneg %p1234_p0  ;;  %p779_p7 = scmp.lt.u32.totalorder %s1083_s30, %s1212_s2 }
  0x5c   : > { %p780_p2 = scmp.lt.u32.totalorder %s778_s6, %s773_s9  ;;  %p782_p13 = scmp.lt.u32.totalorder %s773_s9, %s1083_s30 }
  0x5d   : > { %p776_p5 = pnand %p774_p4, %p1235_p9 }
  0x5e   : > { %p781_p10 = por %p780_p2, %p779_p7 }
  0x5f   : > { %p777_p6 = pneg %p776_p5 }
  0x60   : > { %p783_p11 = por %p782_p13, %p781_p10 }
  0x62   : > { %p784_p8 = pnand %p783_p11, %p777_p6 }
  0x64   : > { %787 = shalt.err (!%p784_p8)
}
  0x65   : > { %s788_s7 = scalar_lea.vmem %s1085_s28, 32  ;;  %p1236_p12 = pmov %p1235_p9 }
  0x66   : > { %p789_p3 = scmp.ne.s32.totalorder %s1085_s28, %s788_s7  ;;  %s904_s25 = smov [#allocation7]  }
  0x67   : > { %s793_s26 = sshll.u32 %s904_s25, 4  ;;  %s794_s26 = int_to_ptr.vmem [resolvable:$false] %s793_s26 }
  0x68   : > { %p791_p1 = pnand %p789_p3, %p1236_p12  ;;  %s795_s1 = scalar_lea.vmem %s794_s26, 64 }
  0x69   : > { %p796_p9 = scmp.lt.s32.totalorder %s1085_s28, %s794_s26  ;;  %p797_p5 = scmp.lt.s32.totalorder %s795_s1, %s788_s7 }
  0x6a   : > { %p792_p4 = pneg %p791_p1 }
  0x6b   : > { %p798_p7 = por %p797_p5, %p796_p9 }
  0x6d   : > { %p799_p2 = pnand %p798_p7, %p792_p4 }
  0x6f   : > { %802 = shalt.err (!%p799_p2)
}
  0x70   : > { %641 = dma.hbm_to_vmem [thread:$0]  (!%p1234_p0), %s1083_s30, 32, %s1085_s28, %s1003_s12  }
  0x71   : > { %p1237_p6 = scmp.ne.s32.totalorder %s1232_s5, 0 }
  0x72   : > { %p1238_p10 = scmp.eq.s32.totalorder (!%p1237_p6), %s1032_s23, 0 }
  0x73   : > { %246 = sbr.rel (%p1237_p6) target bundleno = 433 (0x1b1), region = 36 }
  0x7a   : > { %860 = dma.done.wait (%p1238_p10), [#allocation3], 128   ;;  %p1239_p13 = pmov %p1238_p10 }
  0x7b   : > { %s252_s20 = sand.u32 1, %s1032_s23   ;;  %s254_s8 = sand.u32 1, %s889_s19  }
  0x7c   : > { %862 = vsyncadd (%p1239_p13), [#allocation3], 4294967168  ;;  %s582_s9 = sshll.u32 %s254_s8, 5  ;;  %s253_s11 = scalar_lea.sflag [#allocation6], %s252_s20 }
  0x7d   : > { %s256_s13 = scalar_lea.vmem [#allocation5], %s582_s9  ;;  %p1240_p11 = scmp.ne.s32.totalorder %s1228_s27, 0 }
  0x7f   : > { %864 = dma.done.wait (%p1240_p11), %s253_s11, 544  }
  0x80   : > { %866 = vsyncadd (%p1240_p11), %s253_s11, 4294966752  ;;  %s1139_s28 = sshll.u32 %s254_s8, 1  ;;  %s299_s12 = sand.u32 1, %s877_s16  }
  0x81   : > { %s584_s5 = sshll.u32 %s299_s12, 3  ;;  %s265_s30 = scalar_lea.vmem [#allocation7], %s1139_s28 }
  0x82   : > { %s1145_s29 = scalar_lea.vmem [#allocation8], %s584_s5  ;;  %p592_p0 = scmp.ge.s32.totalorder %s1032_s23, 2 }
  0x83   : > { %v321_v0 = vld [vmem:[%s256_s13] sm:$0xff] (!%p592_p0)  ;;  %v322_v1 = vld [vmem:[%s256_s13 + $0x8] sm:$0xff] (!%p592_p0)  ;;  %v323_v2 = vld [vmem:[%s256_s13 + $0x10] sm:$0xff] (!%p592_p0)  ;;  %v905_v3 = vmov (!%p592_p0), 0.0|0.0   ;;  %vm906_vm0 = vmmov (!%p592_p0), 0   ;;  %v907_v6 = vmov (!%p592_p0), 0.0   ;;  %v424_v30 = vlaneseq (!%p592_p0) }
  0x84   : > { %319 = sbr.rel (%p592_p0) target bundleno = 399 (0x18f), region = 52  ;;  %615 = vmatprep.subr.bf16.mxu0 (!%p592_p0), %v905_v3  ;;  %v616_v4 = vpack.c.bf16 (!%p592_p0), %v322_v1, %v321_v0  ;;  %v324_v5 = vld [vmem:[%s256_s13 + $0x18] sm:$0xff] (!%p592_p0)  ;;  %612 = vmatprep.mubr.msk.f32.mxu0 (!%p592_p0), %vm906_vm0, %v907_v6  ;;  %vm325_vm1 = vcmask (!%p592_p0), 261120   ;;  %v417_v32 = vld [vmem:[%s265_s30] sm:$0x1] (!%p592_p0) }
  0x85   : > { %v619_v7 = vpack.c.bf16 (!%p592_p0), %v324_v5, %v323_v2  ;;  %v320_v8 = vld [vmem:[#allocation2] sm:$0xff] (!%p592_p0)  ;;  %v425_v31 = vshrl.u32 (!%p592_p0), %v424_v30, 7  ;;  %v418_v36 = vld [vmem:[%s265_s30 + $0x1] sm:$0x1] (!%p592_p0) }
  0x86   : > { %617 = vmatpush3.bf16.msra.mxu0 (!%p592_p0), %v616_v4 }
  0x87   : > { %618 = vmatprep.subr.bf16.mxu0 (!%p592_p0), %v905_v3  ;;  %v426_v33 = vsub.s32 (!%p592_p0), 0, %v425_v31 }
  0x8a   : > { %620 = vmatpush3.bf16.msra.mxu0 (!%p592_p0), %v619_v7 }
  0x8d   : > { %613 = vmatmul.mubr.msk.f32.vlgmr.msra.gmra.mrb[0].mxu0 %vm325_vm1, %v320_v8 }
 0x160   : > { %v395_v9 = vpop.f32.mrb[0].mxu0 }
 0x161   : > { %v399_v10 = vrot.slane %v395_v9, 4  ;;  %v405_v11 = vmul.f32 %v395_v9, %v395_v9  ;;  %v614_v12 = vpop.f32.mrb[1].mxu0 }
 0x163   : > { %v400_v13 = vadd.f32 %v399_v10, %v395_v9  ;;  %v406_v14 = vrot.slane %v405_v11, 4 }
 0x165   : > { %v401_v15 = vrot.slane %v400_v13, 2  ;;  %v407_v16 = vadd.f32 %v406_v14, %v405_v11 }
 0x167   : > { %v402_v17 = vadd.f32 %v401_v15, %v400_v13  ;;  %v408_v18 = vrot.slane %v407_v16, 2 }
 0x169   : > { %v403_v19 = vrot.slane %v402_v17, 1  ;;  %v409_v20 = vadd.f32 %v408_v18, %v407_v16 }
 0x16b   : > { %v404_v21 = vadd.f32 %v403_v19, %v402_v17  ;;  %v410_v22 = vrot.slane %v409_v20, 1 }
 0x16d   : > { %v411_v23 = vadd.f32 %v410_v22, %v409_v20  ;;  %v412_v24 = vmul.f32 0.125, %v404_v21 }
 0x16f   : > { %v413_v25 = vmul.f32 0.125, %v411_v23  ;;  %v414_v26 = vmul.f32 %v412_v24, %v412_v24 }
 0x171   : > { %v415_v27 = vsub.f32 %v413_v25, %v414_v26 }
 0x173   : > { %v416_v28 = vmax.f32 %v415_v27, 0.0 }
 0x175   : > { %v419_v29 = vadd.f32 1e-05, %v416_v28 }
 0x177   : > { %713 = vrsqrt.f32 %v419_v29 }
 0x181   : > { %v714_v34 = vpop.eup %713 }
 0x182   : > { %v421_v35 = vmul.f32 %v714_v34, %v417_v32 }
 0x184   : > { %v422_v37 = vmul.f32 %v421_v35, %v412_v24  ;;  %v427_v38 = vrot.slane %v421_v35, %v426_v33 }
 0x186   : > { %v423_v39 = vsub.f32 %v418_v36, %v422_v37  ;;  %v428_v40 = vmul.f32 %v427_v38, %v395_v9 }
 0x188   : > { %v432_v41 = vrot.slane %v423_v39, %v426_v33 }
 0x18a   : > { %v433_v42 = vadd.f32 %v432_v41, %v428_v40 }
 0x18c   : > { %v434_v43 = vmax.f32 %v433_v42, 0.0 }
 0x18e   : > { %435 = vst [vmem:[%s1145_s29] sm:$0xff] %v434_v43 }
 0x18f PF: > { %p594_p8 = scmp.lt.s32.totalorder %s1032_s23, 2 }
 0x190   : > { %v440_v44 = vld [vmem:[%s1213_s3] sm:$0xff] (!%p594_p8) }
 0x191   : > { %439 = sbr.rel (%p594_p8) target bundleno = 408 (0x198), region = 56  ;;  %441 = vst [vmem:[%s1145_s29] sm:$0xff] (!%p594_p8), %v440_v44 }
 0x198 PF: > { %s596_s14 = sshll.u32 %s1032_s23, 7  ;;  %s456_s26 = sshll.u32 %s1145_s29, 4  ;;  %s457_s26 = int_to_ptr.vmem [resolvable:$true] %s456_s26 }
 0x199   : > { %s1162_s25 = scalar_lea.hbm %s1214_s4, %s596_s14  ;;  %s443_s1 = scalar_lea.sflag [#allocation4], %s299_s12 }
 0x19a   : > { %s803_s20 = scalar_lea.vmem %s457_s26, 128  ;;  %p1241_p12 = scmp.ne.s32.totalorder %s1230_s18, 0 }
 0x19b   : > { %p804_p3 = scmp.ne.s32.totalorder %s457_s26, %s803_s20  ;;  %s908_s8 = smov [#allocation8]  }
 0x19c   : > { %s807_s9 = sshll.u32 %s908_s8, 4  ;;  %s808_s9 = int_to_ptr.vmem [resolvable:$false] %s807_s9 }
 0x19d   : > { %p805_p1 = pnand %p804_p3, %p1241_p12  ;;  %s809_s11 = scalar_lea.vmem %s808_s9, 256 }
 0x19e   : > { %p810_p9 = scmp.lt.s32.totalorder %s457_s26, %s808_s9  ;;  %p811_p5 = scmp.lt.s32.totalorder %s809_s11, %s803_s20 }
 0x19f   : > { %p806_p4 = pneg %p805_p1 }
 0x1a0   : > { %p812_p7 = por %p811_p5, %p810_p9 }
 0x1a2   : > { %p813_p2 = pnand %p812_p7, %p806_p4 }
 0x1a4   : > { %816 = shalt.err (!%p813_p2)
}
 0x1a5   : > { %s817_s23 = scalar_lea.hbm %s1162_s25, 128  ;;  %s821_s12 = scalar_lea.hbm %s1214_s4, 384 }
 0x1a6   : > { %p818_p6 = scmp.ne.s32.totalorder %s1162_s25, %s817_s23  ;;  %p822_p11 = scmp.lt.u32.totalorder %s1162_s25, %s1214_s4 }
 0x1a7   : > { %p823_p0 = scmp.lt.u32.totalorder %s821_s12, %s817_s23  ;;  %p825_p3 = scmp.lt.u32.totalorder %s817_s23, %s1162_s25 }
 0x1a8   : > { %p819_p10 = pnand %p818_p6, %p1241_p12 }
 0x1a9   : > { %p824_p8 = por %p823_p0, %p822_p11 }
 0x1aa   : > { %p820_p13 = pneg %p819_p10 }
 0x1ab   : > { %p826_p1 = por %p825_p3, %p824_p8 }
 0x1ad   : > { %p827_p4 = pnand %p826_p1, %p820_p13 }
 0x1af   : > { %830 = shalt.err (!%p827_p4)
}
 0x1b0   : > { %629 = dma.vmem_to_hbm [thread:$0]  (%p1241_p12), %s457_s26, 128, %s1162_s25, %s443_s1  }
 0x1b1 PF: > { %p649_p9 = scmp.ge.s32.totalorder %s897_s21, 2  ;;  %s468_s29 = sand.u32 1, %s873_s15  }
 0x1b2   : > { %p1242_p5 = scmp.ne.s32.totalorder %s1231_s10, 0  ;;  %s469_s27 = scalar_lea.sflag [#allocation4], %s468_s29 }
 0x1b4   : > { %p643_p7 = pnand %p649_p9, %p1242_p5 }
 0x1b6   : > { %868 = dma.done.wait (!%p643_p7), %s469_s27, 128  }
 0x1b7   : > { %870 = vsyncadd (!%p643_p7), %s469_s27, 4294967168  ;;  %s1243_s6 = sld [smem:[#allocation14_spill]]  ;;  %s1244_s14 = sld [smem:[#allocation12_spill]] }
 0x1b8   : > { %s1245_s20 = sld [smem:[#allocation13_spill]]  ;;  %p18_p12 = scmp.ge.s32.totalorder %s970_s22, 5  }
 0x1b9   : > { %s1246_s15 = smov %s877_s16  ;;  %s1247_s16 = smov %s881_s17 }
 0x1ba   : > { %s1249_s18 = smov %s889_s19  ;;  %s1251_s21 = smov %s970_s22 }
 0x1bb   :  { %20 = sbr.rel (!%p18_p12) target bundleno = 10 (0xa), region = 108 }
 0x1bd   : > { %s1248_s17 = smov %s1243_s6  ;;  %s1250_s19 = smov %s1244_s14 }
 0x1c2   :  { %474 = vsyncpa [#allocation3], 1 }
 0x1c3   :  { %476 = vsyncpa [#allocation3 + $0x1], 1 }
 0x1c4   :  { %477 = vsyncpa [#allocation6], 1 }
 0x1c5   :  { %479 = vsyncpa [#allocation6 + $0x1], 1 }
 0x1c6   :  { %480 = vsyncpa [#allocation4], 1 }
 0x1c7   :  { %482 = vsyncpa [#allocation4 + $0x1], 1 }

</bundles_post_ra>
